<compile_context>
chip_gen: v6e
topology: v6e:2x2x1
jax: 0.10.0
libtpu: 0.0.40
codegen_flags: <defaults>
</compile_context>

<pallas_src>
import functools
import math

import jax
import jax.numpy as jnp
from jax.experimental import pallas as pl
from jax.experimental.pallas import tpu as pltpu

NUM_CLASSES = 2
EFF_FEATURES = 1536   # efficientnet_b3.classifier[1].in_features
RES_FEATURES = 2048   # resnet50.fc.in_features
LANE = 128


def _round_up(n, m):
    return ((n + m - 1) // m) * m


def _sublane_quantum(itemsize):
    # f32 -> 8, bf16 -> 16, int8/fp8 -> 32 rows per native VMEM tile.
    return max(8, 32 // max(int(itemsize), 1))


def _pick_batch_block(B, C, HW, itemsize, x_budget_bytes):
    """Images per grid step: rows-per-block must be sublane-aligned (or cover
    the whole array), fit the double-buffered VMEM budget, and (when possible)
    leave >= 2 grid steps so both v7x TensorCores get work."""
    sub = _sublane_quantum(itemsize)
    g = sub // math.gcd(C, sub)                 # image granularity for alignment
    bytes_per_image = C * HW * itemsize
    cap = max(1, int(x_budget_bytes // (2 * bytes_per_image)))   # double-buffered
    if B <= g or cap < g:
        # Single block covering the whole batch: block dims == array dims, so
        # no alignment requirement.  (For huge images with cap < g this may
        # exceed the budget; acceptable fallback for this model's shapes.)
        return B
    bpb = min(cap, B)
    bpb -= bpb % g
    if bpb >= B:
        # v7x: prefer >= 2 batch grid steps so both TensorCores are used.
        half = ((B + 1) // 2 + g - 1) // g * g
        bpb = half if half < B else B
    return max(bpb, g)


def _ensemble_kernel(*refs, C, bpb, total_b, mask_tail, has_siglip):
    if has_siglip:
        x_ref, wrows_ref, sel_ref, bias_ref, sig_ref, out_ref = refs
    else:
        x_ref, wrows_ref, sel_ref, bias_ref, out_ref = refs

    # GAP: spatial sum over the full HW extent.  Cast per-tile to f32 BEFORE
    # summing (keeps precision when x arrives as bf16).  The 1/HW factor is
    # folded into wrows_ref, so no division here.
    gap = jnp.sum(x_ref[...].astype(jnp.float32), axis=-1, keepdims=True)  # (bpb*C, 1)

    if mask_tail:
        # Last batch block may be ragged: rows past the real batch hold
        # unspecified data -> zero them so the tiny matmul below cannot mix
        # garbage (NaN/Inf) into valid output rows.
        valid_rows = jnp.minimum(total_b - pl.program_id(0) * bpb, bpb) * C
        row_id = jax.lax.broadcasted_iota(jnp.int32, gap.shape, 0)
        gap = jnp.where(row_id < valid_rows, gap, 0.0)

    # Per-row FMA against the row-replicated (folded) weights, then a tiny
    # group-of-C reduction via a constant selection matrix (one small MXU pass
    # per batch block; everything stays lane-dense at 128 lanes).
    contrib = gap * wrows_ref[...]                                  # (bpb*C, ncp)
    out = jnp.dot(sel_ref[...], contrib,
                  preferred_element_type=jnp.float32) + bias_ref[...]
    if has_siglip:
        out = out + sig_ref[...]        # w2 already folded into sig in wrapper
    out_ref[...] = out.astype(out_ref.dtype)


def ensemble_forward(params, x, siglip_output=None, *,
                     x_vmem_budget_bytes=24 * 1024 * 1024,
                     vmem_limit_bytes=40 * 1024 * 1024):
    """JAX/Pallas equivalent of EnsembleModel.forward."""
    B, C, H, W = x.shape
    HW = H * W
    nc = params["b_eff_cls"].shape[0]
    has_siglip = siglip_output is not None

    # ---- parameter-only precompute (hoisted out of the kernel) -------------
    w = jax.nn.softmax(params["ensemble_weights"], axis=0)        # softmax(dim=0)
    if has_siglip:
        w0, w1, w2 = w[0], w[1], w[2]
    else:
        w01 = w[:2] / jnp.sum(w[:2])                              # 2-way renorm
        w0, w1 = w01[0], w01[1]

    w_eff = params["w_eff_feat"] @ params["w_eff_cls"]            # (C, nc)
    w_res = params["w_res_feat"] @ params["w_res_cls"]            # (C, nc)
    w_comb = (w0 * w_eff + w1 * w_res) * (1.0 / HW)               # (C, nc)  (GAP folded)
    b_comb = w0 * params["b_eff_cls"] + w1 * params["b_res_cls"]  # (nc,)

    # ---- tiling -------------------------------------------------------------
    ncp = _round_up(max(nc, 1), LANE)            # lane-dense output (no vst.msk)
    bpb = _pick_batch_block(B, C, HW, jnp.dtype(x.dtype).itemsize,
                            x_vmem_budget_bytes)
    rows_blk = bpb * C
    n_blocks = pl.cdiv(B, bpb)
    mask_tail = (B % bpb) != 0

    # x: pure reshape, native dtype, no padding, no extra HBM copy.
    x2 = x.reshape(B * C, HW)

    # Tiny constants (parameter-only): row-replicated weights, group-of-C
    # selection matrix, lane-padded bias.
    wrows = jnp.zeros((rows_blk, ncp), jnp.float32).at[:, :nc].set(
        jnp.tile(w_comb, (bpb, 1)))
    sel = jnp.repeat(jnp.eye(bpb, dtype=jnp.float32), C, axis=1)   # (bpb, bpb*C)
    bias = jnp.zeros((1, ncp), jnp.float32).at[0, :nc].set(b_comb)

    args = [x2, wrows, sel, bias]
    in_specs = [
        pl.BlockSpec((rows_blk, HW), lambda bi: (bi, 0)),
        pl.BlockSpec((rows_blk, ncp), lambda bi: (0, 0)),
        pl.BlockSpec((bpb, rows_blk), lambda bi: (0, 0)),
        pl.BlockSpec((1, ncp), lambda bi: (0, 0)),
    ]
    if has_siglip:
        sig = jnp.zeros((B, ncp), jnp.float32).at[:, :nc].set(
            w2 * siglip_output.astype(jnp.float32))
        args.append(sig)
        in_specs.append(pl.BlockSpec((bpb, ncp), lambda bi: (bi, 0)))

    out = pl.pallas_call(
        functools.partial(_ensemble_kernel, C=C, bpb=bpb, total_b=B,
                          mask_tail=mask_tail, has_siglip=has_siglip),
        out_shape=jax.ShapeDtypeStruct((B, ncp), jnp.float32),
        grid_spec=pltpu.PrefetchScalarGridSpec(
            num_scalar_prefetch=0,
            grid=(n_blocks,),
            in_specs=in_specs,
            out_specs=pl.BlockSpec((bpb, ncp), lambda bi: (bi, 0)),
        ),
        compiler_params=pltpu.CompilerParams(
            dimension_semantics=("parallel",),
            vmem_limit_bytes=vmem_limit_bytes),
    )(*args)

    return out[:, :nc]


def ensemble_reference(params, x, siglip_output=None):
    """Pure-JAX reference (two-stage matmuls, exact module semantics)."""
    B, C, H, W = x.shape
    pooled = x.astype(jnp.float32).reshape(B, C, H * W).mean(-1)
    eff = pooled @ params["w_eff_feat"] @ params["w_eff_cls"] + params["b_eff_cls"]
    res = pooled @ params["w_res_feat"] @ params["w_res_cls"] + params["b_res_cls"]
    w = jax.nn.softmax(params["ensemble_weights"], axis=0)
    if siglip_output is None:
        adj = w[:2] / w[:2].sum()
        return adj[0] * eff + adj[1] * res
    return w[0] * eff + w[1] * res + w[2] * siglip_output


def init_params(key, in_channels=3, num_classes=NUM_CLASSES):
    ks = jax.random.split(key, 6)
    return {
        # stand-in backbone feature projections (deterministic, synthetic)
        "w_eff_feat": 0.05 * jax.random.normal(ks[0], (in_channels, EFF_FEATURES), jnp.float32),
        "w_res_feat": 0.05 * jax.random.normal(ks[1], (in_channels, RES_FEATURES), jnp.float32),
        # replaced classifier heads (as in __init__)
        "w_eff_cls": 0.02 * jax.random.normal(ks[2], (EFF_FEATURES, num_classes), jnp.float32),
        "b_eff_cls": 0.01 * jax.random.normal(ks[3], (num_classes,), jnp.float32),
        "w_res_cls": 0.02 * jax.random.normal(ks[4], (RES_FEATURES, num_classes), jnp.float32),
        "b_res_cls": 0.01 * jax.random.normal(ks[5], (num_classes,), jnp.float32),
        # nn.Parameter(torch.ones(3) / 3)
        "ensemble_weights": jnp.ones((3,), jnp.float32) / 3.0,
    }


if __name__ == "__main__":
    key = jax.random.PRNGKey(0)
    k_param, k_x, k_sig, k_x2 = jax.random.split(key, 4)

    # Case 1 & 2: small image batch (single full-batch block), with and
    # without siglip_output (exercises both ensemble-weight branches).
    B, C, H, W = 2, 3, 16, 16
    x = jax.random.normal(k_x, (B, C, H, W), jnp.float32)
    siglip = jax.random.normal(k_sig, (B, NUM_CLASSES), jnp.float32)
    params = init_params(k_param, in_channels=C)

    out_none = jax.block_until_ready(ensemble_forward(params, x, siglip_output=None))
    ref_none = ensemble_reference(params, x, siglip_output=None)
    out_sig = jax.block_until_ready(ensemble_forward(params, x, siglip_output=siglip))
    ref_sig = ensemble_reference(params, x, siglip_output=siglip)

    assert out_none.shape == (B, NUM_CLASSES)
    assert out_sig.shape == (B, NUM_CLASSES)
    assert jnp.allclose(out_none, ref_none, atol=1e-5, rtol=1e-5)
    assert jnp.allclose(out_sig, ref_sig, atol=1e-5, rtol=1e-5)

    # Case 3: larger batch -> multi-step parallel batch grid with a ragged
    # last block (exercises the in-kernel tail mask).
    B3, H3, W3 = 9, 8, 8
    x3 = jax.random.normal(k_x2, (B3, C, H3, W3), jnp.float32)
    out3 = jax.block_until_ready(ensemble_forward(params, x3, siglip_output=None))
    ref3 = ensemble_reference(params, x3, siglip_output=None)
    assert out3.shape == (B3, NUM_CLASSES)
    assert jnp.allclose(out3, ref3, atol=1e-5, rtol=1e-5)

    # Case 4: bf16 input DMA'd in native dtype, cast to f32 inside the kernel.
    x_bf = x.astype(jnp.bfloat16)
    out_bf = jax.block_until_ready(ensemble_forward(params, x_bf, siglip_output=None))
    ref_bf = ensemble_reference(params, x_bf, siglip_output=None)
    assert jnp.allclose(out_bf, ref_bf, atol=1e-4, rtol=1e-4)

    print("KERNEL_OK")
</pallas_src>

<mosaic_0001>
module attributes {stable_mosaic.version = 11 : i64} {
  func.func @_ensemble_kernel(%arg0: i32, %arg1: memref<6x256xf32, #tpu.memory_space<vmem>>, %arg2: memref<6x128xf32, #tpu.memory_space<vmem>>, %arg3: memref<2x6xf32, #tpu.memory_space<vmem>>, %arg4: memref<1x128xf32, #tpu.memory_space<vmem>>, %arg5: memref<2x128xf32, #tpu.memory_space<vmem>>) attributes {dimension_semantics = [#tpu.dimension_semantics<parallel>], iteration_bounds = array<i64: 1>, scalar_prefetch = 0 : i64, scratch_operands = 0 : i64, tpu.core_type = #tpu.core_type<tc>, window_params = [{transform_indices = @transform_0, window_bounds = array<i64: 6, 256>}, {pipeline_mode = #tpu.pipeline_mode<synchronous>, transform_indices = @transform_1, window_bounds = array<i64: 6, 128>}, {pipeline_mode = #tpu.pipeline_mode<synchronous>, transform_indices = @transform_2, window_bounds = array<i64: 2, 6>}, {pipeline_mode = #tpu.pipeline_mode<synchronous>, transform_indices = @transform_3, window_bounds = array<i64: 1, 128>}, {transform_indices = @transform_4, window_bounds = array<i64: 2, 128>}]} {
    %c0 = arith.constant 0 : index
    %c0_0 = arith.constant 0 : index
    %0 = vector.load %arg1[%c0, %c0_0] : memref<6x256xf32, #tpu.memory_space<vmem>>, vector<6x256xf32>
    %cst = arith.constant dense<0.000000e+00> : vector<6xf32>
    %1 = vector.multi_reduction <add>, %0, %cst [1] : vector<6x256xf32> to vector<6xf32>
    %2 = vector.shape_cast %1 : vector<6xf32> to vector<6x1xf32>
    %c0_1 = arith.constant 0 : index
    %c0_2 = arith.constant 0 : index
    %3 = vector.load %arg2[%c0_1, %c0_2] : memref<6x128xf32, #tpu.memory_space<vmem>>, vector<6x128xf32>
    %4 = vector.broadcast %2 : vector<6x1xf32> to vector<6x128xf32>
    %5 = arith.mulf %4, %3 : vector<6x128xf32>
    %c0_3 = arith.constant 0 : index
    %c0_4 = arith.constant 0 : index
    %6 = vector.load %arg3[%c0_3, %c0_4] : memref<2x6xf32, #tpu.memory_space<vmem>>, vector<2x6xf32>
    %cst_5 = arith.constant dense<0.000000e+00> : vector<2x128xf32>
    %7 = tpu.matmul %6, %5, %cst_5 {dimension_numbers = #tpu.dot_dimension_numbers<[1], [0], [0], [1], [0, 0, 1, 1], [], []>} : vector<2x6xf32>, vector<6x128xf32>, vector<2x128xf32> -> vector<2x128xf32>
    %c0_6 = arith.constant 0 : index
    %c0_7 = arith.constant 0 : index
    %8 = vector.load %arg4[%c0_6, %c0_7] : memref<1x128xf32, #tpu.memory_space<vmem>>, vector<1x128xf32>
    %9 = vector.broadcast %8 : vector<1x128xf32> to vector<2x128xf32>
    %10 = arith.addf %7, %9 : vector<2x128xf32>
    %c0_8 = arith.constant 0 : index
    %c0_9 = arith.constant 0 : index
    %11 = vector.load %arg5[%c0_8, %c0_9] : memref<2x128xf32, #tpu.memory_space<vmem>>, vector<2x128xf32>
    tpu.vector_store %arg5[%c0_8, %c0_9], %10 {strides = array<i32>} : memref<2x128xf32, #tpu.memory_space<vmem>>, vector<2x128xf32>,
    return
  }
  func.func @transform_0(%arg0: i32) -> (i32, i32) {
    %c0_i32 = arith.constant 0 : i32
    %c0_i32_0 = arith.constant 0 : i32
    return %arg0, %c0_i32 : i32, i32
  }
  func.func @transform_1(%arg0: i32) -> (i32, i32) {
    %c0_i32 = arith.constant 0 : i32
    %c0_i32_0 = arith.constant 0 : i32
    %c0_i32_1 = arith.constant 0 : i32
    return %c0_i32, %c0_i32_0 : i32, i32
  }
  func.func @transform_2(%arg0: i32) -> (i32, i32) {
    %c0_i32 = arith.constant 0 : i32
    %c0_i32_0 = arith.constant 0 : i32
    %c0_i32_1 = arith.constant 0 : i32
    return %c0_i32, %c0_i32_0 : i32, i32
  }
  func.func @transform_3(%arg0: i32) -> (i32, i32) {
    %c0_i32 = arith.constant 0 : i32
    %c0_i32_0 = arith.constant 0 : i32
    %c0_i32_1 = arith.constant 0 : i32
    return %c0_i32, %c0_i32_0 : i32, i32
  }
  func.func @transform_4(%arg0: i32) -> (i32, i32) {
    %c0_i32 = arith.constant 0 : i32
    %c0_i32_0 = arith.constant 0 : i32
    return %arg0, %c0_i32 : i32, i32
  }
}

</mosaic_0001>

<bundles_post_ra>
// kernel: tpu_custom_call.1
= control target key start
LH: loop header
LB: loop body
LE: loop exit
PB: predicated region body
PF: predicated region fallthrough
CT: control target
= control target key end

     0   :  { %9 = vsyncpa [#allocation3], 0  ;;  %s283_s0 = inlined_call_operand.hbm [shape: f32[6,256], index: 0, kind: input, shape index: {}]   ;;  %s284_s1 = inlined_call_operand.hbm [shape: f32[6,128], index: 1, kind: input, shape index: {}]   ;;  %s285_s2 = inlined_call_operand.vmem [shape: f32[2,6], index: 2, kind: input, shape index: {}]   ;;  %s286_s3 = inlined_call_operand.vmem [shape: f32[1,128], index: 3, kind: input, shape index: {}]   ;;  %s287_s4 = inlined_call_operand.hbm [shape: f32[2,128], index: 4, kind: output, shape index: {}]  }
   0x1   :  { %10 = vsyncpa [#allocation6], 0 }
   0x2   :  { %11 = vsyncpa [#allocation4], 0  ;;  %s235_s15 = smov [#allocation2]   ;;  %s236_s17 = smov [#allocation5]  }
   0x3   :  { %s18_s16 = sshll.u32 %s235_s15, 4  ;;  %s28_s18 = sshll.u32 %s236_s17, 4  ;;  %s19_s16 = int_to_ptr.vmem [resolvable:$true] %s18_s16  ;;  %s29_s18 = int_to_ptr.vmem [resolvable:$true] %s28_s18 }
   0x4   :  { %s177_s19 = scalar_lea.vmem %s19_s16, 256  ;;  %p182_p1 = scmp.lt.s32.totalorder %s19_s16, %s19_s16 }
   0x5   :  { %p178_p0 = scmp.ne.s32.totalorder %s19_s16, %s177_s19  ;;  %p183_p2 = scmp.lt.s32.totalorder %s177_s19, %s177_s19 }
   0x7   :  { %p184_p3 = por %p183_p2, %p182_p1 }
   0x9   :  { %p185_p4 = pnand %p184_p3, %p178_p0 }
   0xb   :  { %188 = shalt.err (!%p185_p4)
}
   0xc   :  { %21 = dma.hbm_to_vmem [thread:$0]  %s283_s0, 256, %s19_s16, [#allocation3]  }
   0xd   :  { %s197_s22 = scalar_lea.vmem %s29_s18, 128  ;;  %p202_p6 = scmp.lt.s32.totalorder %s29_s18, %s29_s18 }
   0xe   :  { %p198_p5 = scmp.ne.s32.totalorder %s29_s18, %s197_s22  ;;  %p203_p7 = scmp.lt.s32.totalorder %s197_s22, %s197_s22 }
  0x10   :  { %p204_p8 = por %p203_p7, %p202_p6 }
  0x12   :  { %p205_p9 = pnand %p204_p8, %p198_p5 }
  0x14   :  { %208 = shalt.err (!%p205_p9)
}
  0x15   :  { %31 = dma.hbm_to_vmem [thread:$0]  %s284_s1, 128, %s29_s18, [#allocation6]  }
  0x16   :  { %229 = dma.done.wait [#allocation3], 256  }
  0x17   :  { %230 = vsyncadd [#allocation3], 4294967040 }
  0x18   :  { %231 = dma.done.wait [#allocation6], 128  }
  0x19   :  { %232 = vsyncadd [#allocation6], 4294967168  ;;  %vm44_vm0 = vcmask 1045504   ;;  %v42_v0 = vld [vmem:[#allocation2] sm:$0x3f]  ;;  %v237_v5 = vmov 0.0  }
  0x1a   :  { %v43_v1 = vld [vmem:[#allocation2 + $0x8] sm:$0x3f]  ;;  %v45_v2 = vsel %vm44_vm0, %v42_v0, 0.0  ;;  %159 = vmatprep.subr.mxu0 %v237_v5  ;;  %vm238_vm1 = vmmov 0   ;;  %v50_v6 = vld [vmem:[#allocation5] sm:$0x3f] }
  0x1b   :  { %v46_v3 = vsel %vm44_vm0, %v43_v1, 0.0  ;;  %161 = vmatprep.mubr.msk.f32.mxu0 %vm238_vm1, %v237_v5  ;;  %v52_v9 = vld [vmem:[%s285_s2] sm:$0x3]  ;;  %vm60_vm2 = vcmask 48128   ;;  %s239_s27 = smov [#allocation7]  }
  0x1c   :  { %v47_v4 = vadd.f32 %v46_v3, %v45_v2  ;;  %v154_v10 = vld [vmem:[%s286_s3] ss:$0 sm:$0xff]  ;;  %s144_s28 = sshll.u32 %s239_s27, 4  ;;  %s145_s28 = int_to_ptr.vmem [resolvable:$true] %s144_s28 }
  0x1d   :  { %s209_s29 = scalar_lea.vmem %s145_s28, 32  ;;  %p214_p11 = scmp.lt.s32.totalorder %s145_s28, %s145_s28 }
  0x1e   :  { %48 = vadd.xlane.f32.xlu0 %v47_v4  ;;  %p210_p10 = scmp.ne.s32.totalorder %s145_s28, %s209_s29  ;;  %p215_p12 = scmp.lt.s32.totalorder %s209_s29, %s209_s29 }
  0x20   :  { %p216_p13 = por %p215_p12, %p214_p11 }
  0x22   :  { %p217_p0 = pnand %p216_p13, %p210_p10 }
  0xa7   :  { %v49_v7 = vpop.xlane.xlu0 %48 }
  0xa8   :  { %v51_v8 = vmul.f32 %v50_v6, %v49_v7 }
  0xaa   :  { %160 = vmatpush3.msk.msra.mxu0 %vm44_vm0, %v51_v8 }
  0xab   :  { %162 = vmatmul.mubr.msk.f32.vlgmr.msra.gmra.mxu0 %vm60_vm2, %v52_v9 }
 0x16b   :  { %v133_v11 = vpop.f32.mrf.mxu0 }
 0x16c   :  { %v134_v12 = vadd.f32 %v154_v10, %v133_v11 }
 0x16d   :  { %v163_v13 = vpop.f32.mrf.mxu0 }
 0x16e   :  { %137 = vst [vmem:[#allocation7] sm:$0x3] %v134_v12 }
 0x16f   :  { %220 = shalt.err (!%p217_p0)
}
 0x170   :  { %147 = dma.vmem_to_hbm [thread:$0]  %s145_s28, 32, %s287_s4, [#allocation4]  }
 0x171   :  { %233 = dma.done.wait [#allocation4], 32  }
 0x172   :  { %234 = vsyncadd [#allocation4], 4294967264 }
 0x173   :  { %151 = vsyncpa [#allocation3], 1 }
 0x174   :  { %152 = vsyncpa [#allocation6], 1 }
 0x175   :  { %153 = vsyncpa [#allocation4], 1 }

</bundles_post_ra>
